<compile_context>
chip_gen: v6e
topology: v6e:2x2x1
jax: 0.10.0
libtpu: 0.0.40
codegen_flags: <defaults>
</compile_context>

<pallas_src>
import math

import jax
import jax.numpy as jnp
from jax.experimental import pallas as pl
from jax.experimental.pallas import tpu as pltpu

HIDDEN = 50
LANE = 128


def _round_up(x, m):
    return ((x + m - 1) // m) * m


def _cdiv(a, b):
    return -(-a // b)


def _choose_tiling(batch, feat_dim, block_b, itemsize=4):
    """Pick (tile_b, num_tiles, padded_batch) for the lane (batch) dimension."""
    b_lane = _round_up(max(batch, 1), LANE)

    # Cap the double-buffered states tile (2 * tb * D * itemsize bytes) under a
    # budget that is safe on all generations (v5e scoped default 16 MiB,
    # v7x physical 64 MiB); weights/biases/output add only a few tens of KiB.
    budget_bytes = 12 * 1024 * 1024
    cap = max(LANE, (budget_bytes // (2 * feat_dim * itemsize)) // LANE * LANE)
    cap = min(cap, max(LANE, _round_up(block_b, LANE)))

    num_tiles = _cdiv(b_lane, cap)
    if b_lane >= 2 * LANE:
        # v7x has 2 TensorCores: prefer >= 2 tiles and an even tile count.
        num_tiles = max(num_tiles, 2)
        if num_tiles % 2:
            num_tiles += 1

    tb = _round_up(_cdiv(b_lane, num_tiles), LANE)
    num_tiles = _cdiv(b_lane, tb)          # drop fully-empty trailing tiles
    b_pad = num_tiles * tb
    return tb, num_tiles, b_pad


def value_net_kernel(xT_ref,
                     w1_ref, b1_ref,
                     w2_ref, b2_ref,
                     w3_ref, b3_ref,
                     w4_ref,
                     out_ref):
    """One batch tile of the MLP, entirely in VMEM.

    Layout: batch in lanes, features/hidden in sublanes.
      xT:  [D, TB]          (streamed, double-buffered by BlockSpec)
      w1:  [H, D]  w2, w3: [H, H]  w4: [1, H]   (VMEM-resident)
      b1..b3: [H, 1]                            (VMEM-resident)
      out: [1, TB]  lane-dense row (scalar bias b4 added in the wrapper)
    """
    xT = xT_ref[...]

    h = jnp.tanh(
        jnp.dot(w1_ref[...], xT, preferred_element_type=jnp.float32)
        + b1_ref[...])
    h = jnp.tanh(
        jnp.dot(w2_ref[...], h, preferred_element_type=jnp.float32)
        + b2_ref[...])
    h = jnp.tanh(
        jnp.dot(w3_ref[...], h, preferred_element_type=jnp.float32)
        + b3_ref[...])

    out_ref[...] = jnp.dot(
        w4_ref[...], h, preferred_element_type=jnp.float32
    ).astype(out_ref.dtype)


def value_network_forward(states, params, *, block_b=2048):
    """Run the ValueNetwork forward pass via a Pallas TPU kernel.

    states: [B, state_dim] float32
    params: dict with w1..w4 ([out, in], PyTorch layout) and b1..b4 ([out]).
    returns: [B, 1] float32
    """
    B, D = states.shape
    H = params["w1"].shape[0]

    tb, num_tiles, b_pad = _choose_tiling(B, D, block_b)

    # Batch in lanes / features in sublanes: stream states as [D, B_pad].
    states_t = states.T
    if b_pad != B:
        states_t = jnp.pad(states_t, ((0, 0), (0, b_pad - B)))

    w1, w2, w3 = params["w1"], params["w2"], params["w3"]
    w4 = params["w4"].reshape(1, H)
    b1 = params["b1"].reshape(H, 1)
    b2 = params["b2"].reshape(H, 1)
    b3 = params["b3"].reshape(H, 1)

    def resident(shape):
        # Full-array block with a constant index_map -> stays in VMEM, no
        # re-DMA across grid steps.
        return pl.BlockSpec(shape, lambda i: (0, 0))

    in_specs = [
        pl.BlockSpec((D, tb), lambda i: (0, i)),   # states: tiled over batch
        resident(w1.shape), resident(b1.shape),
        resident(w2.shape), resident(b2.shape),
        resident(w3.shape), resident(b3.shape),
        resident(w4.shape),
    ]
    out_spec = pl.BlockSpec((1, tb), lambda i: (0, i))   # lane-dense row slabs

    param_bytes = sum(int(a.size) * a.dtype.itemsize
                      for a in (w1, b1, w2, b2, w3, b3, w4))
    cost = pl.CostEstimate(
        flops=2 * b_pad * (D * H + 2 * H * H + H),
        transcendentals=3 * b_pad * H,
        bytes_accessed=int(states_t.size) * states_t.dtype.itemsize
        + param_bytes + b_pad * 4,
    )

    out_row = pl.pallas_call(
        value_net_kernel,
        out_shape=jax.ShapeDtypeStruct((1, b_pad), jnp.float32),
        grid=(num_tiles,),
        in_specs=in_specs,
        out_specs=out_spec,
        compiler_params=pltpu.CompilerParams(
            dimension_semantics=("parallel",)),   # v7x: shard tiles over 2 TCs
        cost_estimate=cost,
    )(states_t, w1, b1, w2, b2, w3, b3, w4)

    # Fold the scalar output bias into the wrapper epilogue (saves one padded
    # resident VMEM tile and a broadcast add per grid step).
    return out_row[0, :B].reshape(B, 1) + params["b4"].reshape(1, 1)


def init_value_network_params(key, state_dim, hidden=HIDDEN):
    """Init matching torch.nn.Linear's default U(-1/sqrt(fan_in), +1/sqrt(fan_in)).

    Weights are stored in PyTorch's [out_features, in_features] layout.
    """
    dims = [(hidden, state_dim), (hidden, hidden), (hidden, hidden), (1, hidden)]
    params = {}
    for idx, (fan_out, fan_in) in enumerate(dims, start=1):
        key, kw, kb = jax.random.split(key, 3)
        bound = 1.0 / math.sqrt(fan_in)
        params[f"w{idx}"] = jax.random.uniform(
            kw, (fan_out, fan_in), jnp.float32, minval=-bound, maxval=bound)
        params[f"b{idx}"] = jax.random.uniform(
            kb, (fan_out,), jnp.float32, minval=-bound, maxval=bound)
    return params


def value_network_reference(states, params):
    """Plain-JAX reference for correctness checking (PyTorch semantics)."""
    h = jnp.tanh(states @ params["w1"].T + params["b1"])
    h = jnp.tanh(h @ params["w2"].T + params["b2"])
    h = jnp.tanh(h @ params["w3"].T + params["b3"])
    return h @ params["w4"].T + params["b4"]


if __name__ == "__main__":
    key = jax.random.PRNGKey(0)
    key, k_states, k_params, k_big = jax.random.split(key, 4)

    state_dim = 32
    params = init_value_network_params(k_params, state_dim)

    # 1) Small RL-style batch (single 128-lane tile, batch padded).
    batch = 8
    states = jax.random.normal(k_states, (batch, state_dim), jnp.float32)
    out = jax.block_until_ready(value_network_forward(states, params))
    ref = value_network_reference(states, params)
    assert out.shape == (batch, 1)
    assert jnp.allclose(out, ref, atol=1e-4, rtol=1e-4)

    # 2) Multi-tile path with default block_b: 300 rows -> 2 balanced 256-wide
    #    tiles (even count -> both v7x TensorCores busy).
    big_batch = 300
    states_big = jax.random.normal(k_big, (big_batch, state_dim), jnp.float32)
    out_big = jax.block_until_ready(value_network_forward(states_big, params))
    ref_big = value_network_reference(states_big, params)
    assert out_big.shape == (big_batch, 1)
    assert jnp.allclose(out_big, ref_big, atol=1e-4, rtol=1e-4)

    # 3) Small explicit tile size (exercises >2 grid steps: 3 tiles of 128).
    out_small_tiles = jax.block_until_ready(
        value_network_forward(states_big, params, block_b=128))
    assert out_small_tiles.shape == (big_batch, 1)
    assert jnp.allclose(out_small_tiles, ref_big, atol=1e-4, rtol=1e-4)

    print("KERNEL_OK")
</pallas_src>

<mosaic_0001>
module attributes {stable_mosaic.version = 11 : i64} {
  func.func @value_net_kernel(%arg0: i32, %arg1: memref<32x128xf32, #tpu.memory_space<vmem>>, %arg2: memref<50x32xf32, #tpu.memory_space<vmem>>, %arg3: memref<50x1xf32, #tpu.memory_space<vmem>>, %arg4: memref<50x50xf32, #tpu.memory_space<vmem>>, %arg5: memref<50x1xf32, #tpu.memory_space<vmem>>, %arg6: memref<50x50xf32, #tpu.memory_space<vmem>>, %arg7: memref<50x1xf32, #tpu.memory_space<vmem>>, %arg8: memref<1x50xf32, #tpu.memory_space<vmem>>, %arg9: memref<1x128xf32, #tpu.memory_space<vmem>>) attributes {dimension_semantics = [#tpu.dimension_semantics<parallel>], iteration_bounds = array<i64: 1>, scalar_prefetch = 0 : i64, scratch_operands = 0 : i64, tpu.core_type = #tpu.core_type<tc>, window_params = [{transform_indices = @transform_0, window_bounds = array<i64: 32, 128>}, {pipeline_mode = #tpu.pipeline_mode<synchronous>, transform_indices = @transform_1, window_bounds = array<i64: 50, 32>}, {pipeline_mode = #tpu.pipeline_mode<synchronous>, transform_indices = @transform_2, window_bounds = array<i64: 50, 1>}, {pipeline_mode = #tpu.pipeline_mode<synchronous>, transform_indices = @transform_3, window_bounds = array<i64: 50, 50>}, {pipeline_mode = #tpu.pipeline_mode<synchronous>, transform_indices = @transform_4, window_bounds = array<i64: 50, 1>}, {pipeline_mode = #tpu.pipeline_mode<synchronous>, transform_indices = @transform_5, window_bounds = array<i64: 50, 50>}, {pipeline_mode = #tpu.pipeline_mode<synchronous>, transform_indices = @transform_6, window_bounds = array<i64: 50, 1>}, {pipeline_mode = #tpu.pipeline_mode<synchronous>, transform_indices = @transform_7, window_bounds = array<i64: 1, 50>}, {transform_indices = @transform_8, window_bounds = array<i64: 1, 128>}]} {
    %c0 = arith.constant 0 : index
    %c0_0 = arith.constant 0 : index
    %0 = vector.load %arg1[%c0, %c0_0] : memref<32x128xf32, #tpu.memory_space<vmem>>, vector<32x128xf32>
    %c0_1 = arith.constant 0 : index
    %c0_2 = arith.constant 0 : index
    %1 = vector.load %arg2[%c0_1, %c0_2] : memref<50x32xf32, #tpu.memory_space<vmem>>, vector<50x32xf32>
    %cst = arith.constant dense<0.000000e+00> : vector<50x128xf32>
    %2 = tpu.matmul %1, %0, %cst {dimension_numbers = #tpu.dot_dimension_numbers<[1], [0], [0], [1], [0, 0, 1, 1], [], []>} : vector<50x32xf32>, vector<32x128xf32>, vector<50x128xf32> -> vector<50x128xf32>
    %c0_3 = arith.constant 0 : index
    %c0_4 = arith.constant 0 : index
    %3 = vector.load %arg3[%c0_3, %c0_4] : memref<50x1xf32, #tpu.memory_space<vmem>>, vector<50x1xf32>
    %4 = vector.broadcast %3 : vector<50x1xf32> to vector<50x128xf32>
    %5 = arith.addf %2, %4 : vector<50x128xf32>
    %6 = math.tanh %5 : vector<50x128xf32>
    %c0_5 = arith.constant 0 : index
    %c0_6 = arith.constant 0 : index
    %7 = vector.load %arg4[%c0_5, %c0_6] : memref<50x50xf32, #tpu.memory_space<vmem>>, vector<50x50xf32>
    %cst_7 = arith.constant dense<0.000000e+00> : vector<50x128xf32>
    %8 = tpu.matmul %7, %6, %cst_7 {dimension_numbers = #tpu.dot_dimension_numbers<[1], [0], [0], [1], [0, 0, 1, 1], [], []>} : vector<50x50xf32>, vector<50x128xf32>, vector<50x128xf32> -> vector<50x128xf32>
    %c0_8 = arith.constant 0 : index
    %c0_9 = arith.constant 0 : index
    %9 = vector.load %arg5[%c0_8, %c0_9] : memref<50x1xf32, #tpu.memory_space<vmem>>, vector<50x1xf32>
    %10 = vector.broadcast %9 : vector<50x1xf32> to vector<50x128xf32>
    %11 = arith.addf %8, %10 : vector<50x128xf32>
    %12 = math.tanh %11 : vector<50x128xf32>
    %c0_10 = arith.constant 0 : index
    %c0_11 = arith.constant 0 : index
    %13 = vector.load %arg6[%c0_10, %c0_11] : memref<50x50xf32, #tpu.memory_space<vmem>>, vector<50x50xf32>
    %cst_12 = arith.constant dense<0.000000e+00> : vector<50x128xf32>
    %14 = tpu.matmul %13, %12, %cst_12 {dimension_numbers = #tpu.dot_dimension_numbers<[1], [0], [0], [1], [0, 0, 1, 1], [], []>} : vector<50x50xf32>, vector<50x128xf32>, vector<50x128xf32> -> vector<50x128xf32>
    %c0_13 = arith.constant 0 : index
    %c0_14 = arith.constant 0 : index
    %15 = vector.load %arg7[%c0_13, %c0_14] : memref<50x1xf32, #tpu.memory_space<vmem>>, vector<50x1xf32>
    %16 = vector.broadcast %15 : vector<50x1xf32> to vector<50x128xf32>
    %17 = arith.addf %14, %16 : vector<50x128xf32>
    %18 = math.tanh %17 : vector<50x128xf32>
    %c0_15 = arith.constant 0 : index
    %c0_16 = arith.constant 0 : index
    %19 = vector.load %arg8[%c0_15, %c0_16] : memref<1x50xf32, #tpu.memory_space<vmem>>, vector<1x50xf32>
    %cst_17 = arith.constant dense<0.000000e+00> : vector<1x128xf32>
    %20 = tpu.matmul %19, %18, %cst_17 {dimension_numbers = #tpu.dot_dimension_numbers<[1], [0], [0], [1], [0, 0, 1, 1], [], []>} : vector<1x50xf32>, vector<50x128xf32>, vector<1x128xf32> -> vector<1x128xf32>
    %c0_18 = arith.constant 0 : index
    %c0_19 = arith.constant 0 : index
    %21 = vector.load %arg9[%c0_18, %c0_19] : memref<1x128xf32, #tpu.memory_space<vmem>>, vector<1x128xf32>
    tpu.vector_store %arg9[%c0_18, %c0_19], %20 {strides = array<i32>} : memref<1x128xf32, #tpu.memory_space<vmem>>, vector<1x128xf32>,
    return
  }
  func.func @transform_0(%arg0: i32) -> (i32, i32) {
    %c0_i32 = arith.constant 0 : i32
    %c0_i32_0 = arith.constant 0 : i32
    return %c0_i32, %arg0 : i32, i32
  }
  func.func @transform_1(%arg0: i32) -> (i32, i32) {
    %c0_i32 = arith.constant 0 : i32
    %c0_i32_0 = arith.constant 0 : i32
    %c0_i32_1 = arith.constant 0 : i32
    return %c0_i32, %c0_i32_0 : i32, i32
  }
  func.func @transform_2(%arg0: i32) -> (i32, i32) {
    %c0_i32 = arith.constant 0 : i32
    %c0_i32_0 = arith.constant 0 : i32
    %c0_i32_1 = arith.constant 0 : i32
    return %c0_i32, %c0_i32_0 : i32, i32
  }
  func.func @transform_3(%arg0: i32) -> (i32, i32) {
    %c0_i32 = arith.constant 0 : i32
    %c0_i32_0 = arith.constant 0 : i32
    %c0_i32_1 = arith.constant 0 : i32
    return %c0_i32, %c0_i32_0 : i32, i32
  }
  func.func @transform_4(%arg0: i32) -> (i32, i32) {
    %c0_i32 = arith.constant 0 : i32
    %c0_i32_0 = arith.constant 0 : i32
    %c0_i32_1 = arith.constant 0 : i32
    return %c0_i32, %c0_i32_0 : i32, i32
  }
  func.func @transform_5(%arg0: i32) -> (i32, i32) {
    %c0_i32 = arith.constant 0 : i32
    %c0_i32_0 = arith.constant 0 : i32
    %c0_i32_1 = arith.constant 0 : i32
    return %c0_i32, %c0_i32_0 : i32, i32
  }
  func.func @transform_6(%arg0: i32) -> (i32, i32) {
    %c0_i32 = arith.constant 0 : i32
    %c0_i32_0 = arith.constant 0 : i32
    %c0_i32_1 = arith.constant 0 : i32
    return %c0_i32, %c0_i32_0 : i32, i32
  }
  func.func @transform_7(%arg0: i32) -> (i32, i32) {
    %c0_i32 = arith.constant 0 : i32
    %c0_i32_0 = arith.constant 0 : i32
    %c0_i32_1 = arith.constant 0 : i32
    return %c0_i32, %c0_i32_0 : i32, i32
  }
  func.func @transform_8(%arg0: i32) -> (i32, i32) {
    %c0_i32 = arith.constant 0 : i32
    %c0_i32_0 = arith.constant 0 : i32
    return %c0_i32, %arg0 : i32, i32
  }
}

</mosaic_0001>

<bundles_post_ra>
// kernel: tpu_custom_call.1
= control target key start
LH: loop header
LB: loop body
LE: loop exit
PB: predicated region body
PF: predicated region fallthrough
CT: control target
= control target key end

     0   :  { %v932_v1 = vmov 0.0   ;;  %vm83_vm0 = vcmask 261120   ;;  %vm933_vm1 = vmmov 0   ;;  %s1223_s0 = inlined_call_operand.vmem [shape: f32[32,128], index: 0, kind: input, shape index: {}]   ;;  %s1224_s1 = inlined_call_operand.vmem [shape: f32[50,32], index: 1, kind: input, shape index: {}]   ;;  %s1225_s2 = inlined_call_operand.vmem [shape: f32[50,1], index: 2, kind: input, shape index: {}]   ;;  %s1226_s3 = inlined_call_operand.vmem [shape: f32[50,50], index: 3, kind: input, shape index: {}]   ;;  %s1227_s4 = inlined_call_operand.vmem [shape: f32[50,1], index: 4, kind: input, shape index: {}]   ;;  %s1228_s5 = inlined_call_operand.vmem [shape: f32[50,50], index: 5, kind: input, shape index: {}]   ;;  %s1229_s6 = inlined_call_operand.vmem [shape: f32[50,1], index: 6, kind: input, shape index: {}]   ;;  %s1230_s7 = inlined_call_operand.vmem [shape: f32[1,50], index: 7, kind: input, shape index: {}]   ;;  %s1231_s8 = inlined_call_operand.hbm [shape: f32[1,128], index: 8, kind: output, shape index: {}]  }
   0x1   :  { %v33_v0 = vld [vmem:[%s1223_s0 + $0x18] sm:$0xff]  ;;  %738 = vmatprep.subr.mxu0 %v932_v1  ;;  %854 = vmatprep.subr.mxu1 %v932_v1  ;;  %v32_v2 = vld [vmem:[%s1223_s0 + $0x10] sm:$0xff]  ;;  %v31_v3 = vld [vmem:[%s1223_s0 + $0x8] sm:$0xff] }
   0x2   :  { %739 = vmatpush3.msra.mxu0 %v33_v0  ;;  %858 = vmatpush3.msra.mxu1 %v33_v0  ;;  %v30_v4 = vld [vmem:[%s1223_s0] sm:$0xff]  ;;  %v47_v7 = vld [vmem:[%s1225_s2 + $0x30] sm:$0x3] }
   0x3   :  { %740 = vmatprep.subr.mxu0 %v932_v1  ;;  %855 = vmatprep.subr.mxu1 %v932_v1  ;;  %v34_v5 = vld [vmem:[%s1224_s1] sm:$0xff] }
   0x4   :  { %741 = vmatpush3.msra.mxu0 %v32_v2  ;;  %859 = vmatpush3.msra.mxu1 %v32_v2  ;;  %v38_v6 = vld [vmem:[%s1224_s1 + $0x20] sm:$0xff] }
   0x5   :  { %742 = vmatprep.subr.mxu0 %v932_v1  ;;  %856 = vmatprep.subr.mxu1 %v932_v1  ;;  %v45_v8 = vld [vmem:[%s1225_s2 + $0x20] sm:$0xff] }
   0x6   :  { %743 = vmatpush3.msra.mxu0 %v31_v3  ;;  %860 = vmatpush3.msra.mxu1 %v31_v3 }
   0x7   :  { %744 = vmatprep.subr.mxu0 %v932_v1  ;;  %857 = vmatprep.subr.mxu1 %v932_v1 }
   0x8   :  { %745 = vmatpush3.msra.mxu0 %v30_v4  ;;  %861 = vmatpush3.msra.mxu1 %v30_v4 }
   0x9   :  { %746 = vmatprep.mubr.msk.f32.mxu0 %vm933_vm1, %v932_v1  ;;  %758 = vmatprep.mubr.msk.f32.mxu1 %vm933_vm1, %v932_v1 }
   0xa   :  { %747 = vmatmul.mubr.msk.f32.vlgmr.msra.gmra.mxu0 %vm83_vm0, %v34_v5  ;;  %759 = vmatmul.mubr.msk.f32.vlgmr.msra.gmra.mxu1 %vm83_vm0, %v38_v6 }
   0xb   :  { %13 = vsyncpa [#allocation3], 0  ;;  %749 = vmatprep.mubr.msk.f32.mxu0 %vm933_vm1, %v932_v1  ;;  %761 = vmatprep.mubr.msk.f32.mxu1 %vm933_vm1, %v932_v1  ;;  %v35_v9 = vld [vmem:[%s1224_s1 + $0x8] sm:$0xff]  ;;  %v934_v11 = vmov 0   ;;  %v44_v13 = vld [vmem:[%s1225_s2 + $0x18] sm:$0xff]  ;;  %vm283_vm2 = vcmask 1041408  }
   0xc   :  { %v39_v10 = vld [vmem:[%s1224_s1 + $0x28] sm:$0xff]  ;;  %866 = vset.pattern.permute.xlu0 %v934_v11  ;;  %867 = vset.pattern.permute.xlu1 %v934_v11  ;;  %v36_v14 = vld [vmem:[%s1224_s1 + $0x10] sm:$0xff]  ;;  %v37_v18 = vld [vmem:[%s1224_s1 + $0x18] sm:$0xff]  ;;  %vm261_vm3 = vcmask 408576  }
   0xd   :  { %80 = vperm.xlu0 %866, %v47_v7   ;;  %70 = vperm.xlu1 %867, %v45_v8   ;;  %v46_v12 = vld [vmem:[%s1225_s2 + $0x28] sm:$0xff]  ;;  %v40_v15 = vld [vmem:[%s1224_s1 + $0x30] sm:$0x3]  ;;  %v41_v19 = vld [vmem:[%s1225_s2] sm:$0xff]  ;;  %s935_s1 = smov [#allocation2]  }
   0xe   :  { %750 = vmatmul.mubr.msk.f32.gmra.mxu0 %vm83_vm0, %v35_v9  ;;  %762 = vmatmul.mubr.msk.f32.gmra.mxu1 %vm83_vm0, %v39_v10  ;;  %v43_v16 = vld [vmem:[%s1225_s2 + $0x10] sm:$0xff]  ;;  %v42_v17 = vld [vmem:[%s1225_s2 + $0x8] sm:$0xff]  ;;  %v223_v22 = vld [vmem:[%s1227_s4 + $0x20] sm:$0xff]  ;;  %s658_s19 = sshll.u32 %s935_s1, 4  ;;  %s659_s19 = int_to_ptr.vmem [resolvable:$true] %s658_s19 }
   0xf   :  { %752 = vmatprep.mubr.msk.f32.mxu0 %vm933_vm1, %v932_v1  ;;  %764 = vmatprep.mubr.msk.f32.mxu1 %vm933_vm1, %v932_v1  ;;  %v225_v20 = vld [vmem:[%s1227_s4 + $0x30] sm:$0x3]  ;;  %v224_v21 = vld [vmem:[%s1227_s4 + $0x28] sm:$0xff]  ;;  %v222_v23 = vld [vmem:[%s1227_s4 + $0x18] sm:$0xff]  ;;  %s910_s20 = scalar_lea.vmem %s659_s19, 16  ;;  %s914_s21 = scalar_lea.vmem %s659_s19, 32 }
  0x10   :  { %767 = vmatprep.subr.mxu1 %v932_v1  ;;  %802 = vmatprep.subr.mxu0 %v932_v1  ;;  %v221_v24 = vld [vmem:[%s1227_s4 + $0x10] sm:$0xff]  ;;  %v220_v25 = vld [vmem:[%s1227_s4 + $0x8] sm:$0xff]  ;;  %v219_v26 = vld [vmem:[%s1227_s4] sm:$0xff]  ;;  %p911_p0 = scmp.ne.s32.totalorder %s659_s19, %s910_s20  ;;  %p915_p1 = scmp.lt.s32.totalorder %s659_s19, %s659_s19 }
  0x11   :  { %75 = vperm.xlu0 %866, %v46_v12   ;;  %65 = vperm.xlu1 %867, %v44_v13   ;;  %v407_v27 = vld [vmem:[%s1229_s6 + $0x30] sm:$0x3]  ;;  %v406_v28 = vld [vmem:[%s1229_s6 + $0x28] sm:$0xff]  ;;  %v405_v29 = vld [vmem:[%s1229_s6 + $0x20] sm:$0xff]  ;;  %p916_p2 = scmp.lt.s32.totalorder %s914_s21, %s910_s20 }
  0x12   :  { %753 = vmatmul.mubr.msk.f32.gmra.mxu0 %vm83_vm0, %v36_v14  ;;  %765 = vmatmul.mubr.msk.f32.gmra.mxu1 %vm83_vm0, %v40_v15  ;;  %v404_v30 = vld [vmem:[%s1229_s6 + $0x18] sm:$0xff]  ;;  %v403_v31 = vld [vmem:[%s1229_s6 + $0x10] sm:$0xff]  ;;  %v402_v32 = vld [vmem:[%s1229_s6 + $0x8] sm:$0xff] }
  0x13   :  { %755 = vmatprep.mubr.msk.f32.mxu0 %vm933_vm1, %v932_v1  ;;  %781 = vmatprep.mubr.msk.f32.mxu1 %vm933_vm1, %v932_v1  ;;  %v401_v33 = vld [vmem:[%s1229_s6] sm:$0xff]  ;;  %v213_v7 = vld [vmem:[%s1226_s3 + $0x8] sm:$0xff]  ;;  %v214_v8 = vld [vmem:[%s1226_s3 + $0x10] sm:$0xff]  ;;  %p917_p3 = por %p916_p2, %p915_p1 }
  0x14   :  { %v212_v5 = vld [vmem:[%s1226_s3] sm:$0xff]  ;;  %v215_v9 = vld [vmem:[%s1226_s3 + $0x18] sm:$0xff]  ;;  %v217_v11 = vld [vmem:[%s1226_s3 + $0x28] sm:$0xff] }
  0x15   :  { %60 = vperm.xlu0 %866, %v43_v16   ;;  %55 = vperm.xlu1 %867, %v42_v17   ;;  %v216_v10 = vld [vmem:[%s1226_s3 + $0x20] sm:$0xff]  ;;  %v218_v12 = vld [vmem:[%s1226_s3 + $0x30] sm:$0x3]  ;;  %p918_p4 = pnand %p917_p3, %p911_p0 }
  0x16   :  { %756 = vmatmul.mubr.msk.f32.gmra.mxu0 %vm83_vm0, %v37_v18 }
  0x17   :  { %816 = vmatprep.mubr.msk.f32.mxu0 %vm933_vm1, %v932_v1 }
  0x19   :  { %50 = vperm.xlu0 %866, %v41_v19   ;;  %258 = vperm.xlu1 %867, %v225_v20  }
  0x1d   :  { %253 = vperm.xlu0 %866, %v224_v21   ;;  %248 = vperm.xlu1 %867, %v223_v22  }
  0x21   :  { %243 = vperm.xlu0 %866, %v222_v23   ;;  %238 = vperm.xlu1 %867, %v221_v24  }
  0x25   :  { %233 = vperm.xlu0 %866, %v220_v25   ;;  %228 = vperm.xlu1 %867, %v219_v26  }
  0x29   :  { %440 = vperm.xlu0 %866, %v407_v27   ;;  %435 = vperm.xlu1 %867, %v406_v28  }
  0x2d   :  { %430 = vperm.xlu0 %866, %v405_v29   ;;  %425 = vperm.xlu1 %867, %v404_v30  }
  0x31   :  { %420 = vperm.xlu0 %866, %v403_v31   ;;  %415 = vperm.xlu1 %867, %v402_v32  }
  0x35   :  { %410 = vperm.xlu0 %866, %v401_v33  }
  0x88   :  { %v81_v36 = vpop.permute.xlu0 %80  ;;  %v71_v41 = vpop.permute.xlu1 %70 }
  0x8c   :  { %v76_v44 = vpop.permute.xlu0 %75  ;;  %v66_v51 = vpop.permute.xlu1 %65 }
  0x90   :  { %v61_v54 = vpop.permute.xlu0 %60  ;;  %v56_v58 = vpop.permute.xlu1 %55 }
  0x94   :  { %v51_v60 = vpop.permute.xlu0 %50  ;;  %v259_v21 = vpop.permute.xlu1 %258 }
  0x98   :  { %v254_v24 = vpop.permute.xlu0 %253  ;;  %v249_v26 = vpop.permute.xlu1 %248 }
  0x9c   :  { %v244_v31 = vpop.permute.xlu0 %243 }
  0xca   :  { %v171_v34 = vpop.f32.mrf.mxu0  ;;  %v191_v35 = vpop.f32.mrf.mxu1 }
  0xcb   :  { %v192_v52 = vadd.f32 %v191_v35, %v71_v41  ;;  %v172_v61 = vadd.f32 %v171_v34, %v51_v60  ;;  %v239_v34 = vpop.permute.xlu1 %238 }
  0xcc   :  { %v748_v37 = vpop.f32.mrf.mxu0  ;;  %v760_v38 = vpop.f32.mrf.mxu1 }
  0xcd   :  { %v234_v37 = vpop.permute.xlu0 %233 }
  0xce   :  { %v176_v39 = vpop.f32.mrf.mxu0  ;;  %v196_v40 = vpop.f32.mrf.mxu1 }
  0xcf   :  { %v197_v48 = vadd.f32 %v196_v40, %v76_v44  ;;  %v177_v59 = vadd.f32 %v176_v39, %v56_v58  ;;  %v229_v39 = vpop.permute.xlu1 %228 }
  0xd0   :  { %v751_v42 = vpop.f32.mrf.mxu0  ;;  %v763_v43 = vpop.f32.mrf.mxu1 }
  0xd2   :  { %v181_v45 = vpop.f32.mrf.mxu0  ;;  %v201_v46 = vpop.f32.mrf.mxu1 }
  0xd3   :  { %v202_v47 = vadd.f32 %v201_v46, %v81_v36  ;;  %v182_v57 = vadd.f32 %v181_v45, %v61_v54  ;;  %v400_v54 = vld [vmem:[%s1228_s5 + $0x30] sm:$0x3] }
  0xd4   :  { %v754_v49 = vpop.f32.mrf.mxu0  ;;  %v766_v50 = vpop.f32.mrf.mxu1 }
  0xd5   :  { %868 = vtanh.f32 %v202_v47  ;;  %v394_v47 = vld [vmem:[%s1228_s5] sm:$0xff]  ;;  %v395_v49 = vld [vmem:[%s1228_s5 + $0x8] sm:$0xff]  ;;  %v396_v50 = vld [vmem:[%s1228_s5 + $0x10] sm:$0xff] }
  0xd6   :  { %v186_v53 = vpop.f32.mrf.mxu0  ;;  %870 = vtanh.f32 %v197_v48 }
  0xd7   :  { %v187_v55 = vadd.f32 %v186_v53, %v66_v51  ;;  %872 = vtanh.f32 %v192_v52  ;;  %v397_v51 = vld [vmem:[%s1228_s5 + $0x18] sm:$0xff]  ;;  %v398_v52 = vld [vmem:[%s1228_s5 + $0x20] sm:$0xff]  ;;  %v399_v53 = vld [vmem:[%s1228_s5 + $0x28] sm:$0xff] }
  0xd8   :  { %v757_v56 = vpop.f32.mrf.mxu0 }
  0xd9   :  { %874 = vtanh.f32 %v187_v55 }
  0xda   :  { %876 = vtanh.f32 %v182_v57 }
  0xdb   :  { %878 = vtanh.f32 %v177_v59 }
  0xdc   :  { %880 = vtanh.f32 %v172_v61 }
  0xe2   :  { %v869_v62 = vpop.eup %868 }
  0xe3   :  { %768 = vmatpush3.msk.msra.mxu1 %vm283_vm2, %v869_v62  ;;  %v871_v63 = vpop.eup %870 }
  0xe4   :  { %769 = vmatprep.subr.mxu1 %v932_v1  ;;  %v873_v0 = vpop.eup %872 }
  0xe5   :  { %770 = vmatpush3.msra.mxu1 %v871_v63  ;;  %v441_v63 = vpop.permute.xlu0 %440 }
  0xe6   :  { %771 = vmatprep.subr.mxu1 %v932_v1  ;;  %v875_v2 = vpop.eup %874 }
  0xe7   :  { %772 = vmatpush3.msra.mxu1 %v873_v0  ;;  %v877_v3 = vpop.eup %876 }
  0xe8   :  { %773 = vmatprep.subr.mxu1 %v932_v1  ;;  %v879_v4 = vpop.eup %878 }
  0xe9   :  { %774 = vmatpush3.msra.mxu1 %v875_v2  ;;  %v881_v6 = vpop.eup %880 }
  0xea   :  { %775 = vmatprep.subr.mxu1 %v932_v1 }
  0xeb   :  { %776 = vmatpush3.msra.mxu1 %v877_v3  ;;  %v436_v3 = vpop.permute.xlu1 %435 }
  0xec   :  { %777 = vmatprep.subr.mxu1 %v932_v1 }
  0xed   :  { %778 = vmatpush3.msra.mxu1 %v879_v4 }
  0xee   :  { %779 = vmatprep.subr.mxu1 %v932_v1 }
  0xef   :  { %780 = vmatpush3.msra.mxu1 %v881_v6 }
  0xf0   :  { %782 = vmatmul.mubr.msk.f32.vlgmr.msra.gmra.mxu1 %vm261_vm3, %v212_v5  ;;  %837 = vmatprep.subr.mxu1 %v932_v1  ;;  %v431_v5 = vpop.permute.xlu0 %430 }
  0xf1   :  { %784 = vmatprep.mubr.msk.f32.mxu1 %vm933_vm1, %v932_v1 }
  0xf4   :  { %785 = vmatmul.mubr.msk.f32.gmra.mxu1 %vm261_vm3, %v213_v7 }
  0xf5   :  { %787 = vmatprep.mubr.msk.f32.mxu1 %vm933_vm1, %v932_v1 }
  0xf8   :  { %788 = vmatmul.mubr.msk.f32.gmra.mxu1 %vm261_vm3, %v214_v8 }
  0xf9   :  { %790 = vmatprep.mubr.msk.f32.mxu1 %vm933_vm1, %v932_v1 }
  0xfc   :  { %791 = vmatmul.mubr.msk.f32.gmra.mxu1 %vm261_vm3, %v215_v9 }
  0xfd   :  { %793 = vmatprep.mubr.msk.f32.mxu1 %vm933_vm1, %v932_v1 }
 0x100   :  { %794 = vmatmul.mubr.msk.f32.gmra.mxu1 %vm261_vm3, %v216_v10  ;;  %v426_v10 = vpop.permute.xlu1 %425 }
 0x101   :  { %796 = vmatprep.mubr.msk.f32.mxu1 %vm933_vm1, %v932_v1 }
 0x104   :  { %797 = vmatmul.mubr.msk.f32.gmra.mxu1 %vm261_vm3, %v217_v11 }
 0x105   :  { %799 = vmatprep.mubr.msk.f32.mxu1 %vm933_vm1, %v932_v1 }
 0x108   :  { %800 = vmatmul.mubr.msk.f32.gmra.mxu1 %vm261_vm3, %v218_v12 }
 0x109   :  { %851 = vmatprep.mubr.msk.f32.mxu1 %vm933_vm1, %v932_v1 }
 0x1b0   :  { %v353_v13 = vpop.f32.mrf.mxu1 }
 0x1b1   :  { %v354_v40 = vadd.f32 %v353_v13, %v229_v39  ;;  %v421_v13 = vpop.permute.xlu0 %420 }
 0x1b2   :  { %v783_v14 = vpop.f32.mrf.mxu1 }
 0x1b4   :  { %v358_v15 = vpop.f32.mrf.mxu1 }
 0x1b5   :  { %v359_v38 = vadd.f32 %v358_v15, %v234_v37 }
 0x1b6   :  { %v786_v16 = vpop.f32.mrf.mxu1 }
 0x1b7   :  { %v416_v16 = vpop.permute.xlu1 %415 }
 0x1b8   :  { %v363_v17 = vpop.f32.mrf.mxu1 }
 0x1b9   :  { %v364_v36 = vadd.f32 %v363_v17, %v239_v34 }
 0x1ba   :  { %v789_v18 = vpop.f32.mrf.mxu1 }
 0x1bb   :  { %v411_v18 = vpop.permute.xlu0 %410 }
 0x1bc   :  { %v368_v19 = vpop.f32.mrf.mxu1 }
 0x1bd   :  { %v369_v35 = vadd.f32 %v368_v19, %v244_v31 }
 0x1be   :  { %v792_v20 = vpop.f32.mrf.mxu1 }
 0x1c0   :  { %v373_v22 = vpop.f32.mrf.mxu1 }
 0x1c1   :  { %v374_v33 = vadd.f32 %v373_v22, %v249_v26  ;;  %v574_v26 = vld [vmem:[%s1230_s7] sm:$0x1] }
 0x1c2   :  { %v795_v23 = vpop.f32.mrf.mxu1 }
 0x1c4   :  { %v378_v25 = vpop.f32.mrf.mxu1 }
 0x1c5   :  { %v379_v29 = vadd.f32 %v378_v25, %v254_v24 }
 0x1c6   :  { %v798_v27 = vpop.f32.mrf.mxu1 }
 0x1c8   :  { %v383_v28 = vpop.f32.mrf.mxu1 }
 0x1c9   :  { %v384_v30 = vadd.f32 %v383_v28, %v259_v21 }
 0x1ca   :  { %v801_v32 = vpop.f32.mrf.mxu1 }
 0x1cb   :  { %882 = vtanh.f32 %v384_v30 }
 0x1cc   :  { %884 = vtanh.f32 %v379_v29 }
 0x1cd   :  { %886 = vtanh.f32 %v374_v33 }
 0x1ce   :  { %888 = vtanh.f32 %v369_v35 }
 0x1cf   :  { %890 = vtanh.f32 %v364_v36 }
 0x1d0   :  { %892 = vtanh.f32 %v359_v38 }
 0x1d1   :  { %894 = vtanh.f32 %v354_v40 }
 0x1d8   :  { %v883_v41 = vpop.eup %882 }
 0x1d9   :  { %803 = vmatpush3.msk.msra.mxu0 %vm283_vm2, %v883_v41  ;;  %v885_v42 = vpop.eup %884 }
 0x1da   :  { %804 = vmatprep.subr.mxu0 %v932_v1  ;;  %v887_v43 = vpop.eup %886 }
 0x1db   :  { %805 = vmatpush3.msra.mxu0 %v885_v42  ;;  %v889_v44 = vpop.eup %888 }
 0x1dc   :  { %806 = vmatprep.subr.mxu0 %v932_v1  ;;  %v891_v45 = vpop.eup %890 }
 0x1dd   :  { %807 = vmatpush3.msra.mxu0 %v887_v43  ;;  %v893_v46 = vpop.eup %892 }
 0x1de   :  { %808 = vmatprep.subr.mxu0 %v932_v1  ;;  %v895_v48 = vpop.eup %894 }
 0x1df   :  { %809 = vmatpush3.msra.mxu0 %v889_v44 }
 0x1e0   :  { %810 = vmatprep.subr.mxu0 %v932_v1 }
 0x1e1   :  { %811 = vmatpush3.msra.mxu0 %v891_v45 }
 0x1e2   :  { %812 = vmatprep.subr.mxu0 %v932_v1 }
 0x1e3   :  { %813 = vmatpush3.msra.mxu0 %v893_v46 }
 0x1e4   :  { %814 = vmatprep.subr.mxu0 %v932_v1 }
 0x1e5   :  { %815 = vmatpush3.msra.mxu0 %v895_v48 }
 0x1e6   :  { %817 = vmatmul.mubr.msk.f32.vlgmr.msra.gmra.mxu0 %vm261_vm3, %v394_v47 }
 0x1e7   :  { %819 = vmatprep.mubr.msk.f32.mxu0 %vm933_vm1, %v932_v1 }
 0x1ea   :  { %820 = vmatmul.mubr.msk.f32.gmra.mxu0 %vm261_vm3, %v395_v49 }
 0x1eb   :  { %822 = vmatprep.mubr.msk.f32.mxu0 %vm933_vm1, %v932_v1 }
 0x1ee   :  { %823 = vmatmul.mubr.msk.f32.gmra.mxu0 %vm261_vm3, %v396_v50 }
 0x1ef   :  { %825 = vmatprep.mubr.msk.f32.mxu0 %vm933_vm1, %v932_v1 }
 0x1f2   :  { %826 = vmatmul.mubr.msk.f32.gmra.mxu0 %vm261_vm3, %v397_v51 }
 0x1f3   :  { %828 = vmatprep.mubr.msk.f32.mxu0 %vm933_vm1, %v932_v1 }
 0x1f6   :  { %829 = vmatmul.mubr.msk.f32.gmra.mxu0 %vm261_vm3, %v398_v52 }
 0x1f7   :  { %831 = vmatprep.mubr.msk.f32.mxu0 %vm933_vm1, %v932_v1 }
 0x1fa   :  { %832 = vmatmul.mubr.msk.f32.gmra.mxu0 %vm261_vm3, %v399_v53 }
 0x1fb   :  { %834 = vmatprep.mubr.msk.f32.mxu0 %vm933_vm1, %v932_v1 }
 0x1fe   :  { %835 = vmatmul.mubr.msk.f32.gmra.mxu0 %vm261_vm3, %v400_v54 }
 0x2a6   :  { %v533_v55 = vpop.f32.mrf.mxu0 }
 0x2a7   :  { %v534_v19 = vadd.f32 %v533_v55, %v411_v18 }
 0x2a8   :  { %v818_v56 = vpop.f32.mrf.mxu0 }
 0x2aa   :  { %v538_v57 = vpop.f32.mrf.mxu0 }
 0x2ab   :  { %v539_v17 = vadd.f32 %v538_v57, %v416_v16 }
 0x2ac   :  { %v821_v58 = vpop.f32.mrf.mxu0 }
 0x2ae   :  { %v543_v59 = vpop.f32.mrf.mxu0 }
 0x2af   :  { %v544_v15 = vadd.f32 %v543_v59, %v421_v13 }
 0x2b0   :  { %v824_v60 = vpop.f32.mrf.mxu0 }
 0x2b2   :  { %v548_v61 = vpop.f32.mrf.mxu0 }
 0x2b3   :  { %v549_v14 = vadd.f32 %v548_v61, %v426_v10 }
 0x2b4   :  { %v827_v62 = vpop.f32.mrf.mxu0 }
 0x2b6   :  { %v553_v0 = vpop.f32.mrf.mxu0 }
 0x2b7   :  { %v554_v12 = vadd.f32 %v553_v0, %v431_v5 }
 0x2b8   :  { %v830_v2 = vpop.f32.mrf.mxu0 }
 0x2ba   :  { %v558_v4 = vpop.f32.mrf.mxu0 }
 0x2bb   :  { %v559_v8 = vadd.f32 %v558_v4, %v436_v3 }
 0x2bc   :  { %v833_v6 = vpop.f32.mrf.mxu0 }
 0x2be   :  { %v563_v7 = vpop.f32.mrf.mxu0 }
 0x2bf   :  { %v564_v9 = vadd.f32 %v563_v7, %v441_v63 }
 0x2c0   :  { %v836_v11 = vpop.f32.mrf.mxu0 }
 0x2c1   :  { %896 = vtanh.f32 %v564_v9 }
 0x2c2   :  { %898 = vtanh.f32 %v559_v8 }
 0x2c3   :  { %900 = vtanh.f32 %v554_v12 }
 0x2c4   :  { %902 = vtanh.f32 %v549_v14 }
 0x2c5   :  { %904 = vtanh.f32 %v544_v15 }
 0x2c6   :  { %906 = vtanh.f32 %v539_v17 }
 0x2c7   :  { %908 = vtanh.f32 %v534_v19 }
 0x2ce   :  { %v897_v20 = vpop.eup %896 }
 0x2cf   :  { %838 = vmatpush3.msk.msra.mxu1 %vm283_vm2, %v897_v20  ;;  %v899_v21 = vpop.eup %898 }
 0x2d0   :  { %839 = vmatprep.subr.mxu1 %v932_v1  ;;  %v901_v22 = vpop.eup %900 }
 0x2d1   :  { %840 = vmatpush3.msra.mxu1 %v899_v21  ;;  %v903_v23 = vpop.eup %902 }
 0x2d2   :  { %841 = vmatprep.subr.mxu1 %v932_v1  ;;  %v905_v24 = vpop.eup %904 }
 0x2d3   :  { %842 = vmatpush3.msra.mxu1 %v901_v22  ;;  %v907_v25 = vpop.eup %906 }
 0x2d4   :  { %843 = vmatprep.subr.mxu1 %v932_v1  ;;  %v909_v27 = vpop.eup %908 }
 0x2d5   :  { %844 = vmatpush3.msra.mxu1 %v903_v23 }
 0x2d6   :  { %845 = vmatprep.subr.mxu1 %v932_v1 }
 0x2d7   :  { %846 = vmatpush3.msra.mxu1 %v905_v24 }
 0x2d8   :  { %847 = vmatprep.subr.mxu1 %v932_v1 }
 0x2d9   :  { %848 = vmatpush3.msra.mxu1 %v907_v25 }
 0x2da   :  { %849 = vmatprep.subr.mxu1 %v932_v1 }
 0x2db   :  { %850 = vmatpush3.msra.mxu1 %v909_v27 }
 0x2dc   :  { %852 = vmatmul.mubr.msk.f32.vlgmr.msra.gmra.mxu1 %vm261_vm3, %v574_v26 }
 0x39c   :  { %v647_v28 = vpop.f32.mrf.mxu1 }
 0x39d   :  { %651 = vst [vmem:[#allocation2] sm:$0x1] %v647_v28 }
 0x39e   :  { %v853_v29 = vpop.f32.mrf.mxu1 }
 0x39f   :  { %921 = shalt.err (!%p918_p4)
}
 0x3a0   :  { %661 = dma.vmem_to_hbm [thread:$0]  %s659_s19, 16, %s1231_s8, [#allocation3]  }
 0x3a1   :  { %930 = dma.done.wait [#allocation3], 16  }
 0x3a2   :  { %931 = vsyncadd [#allocation3], 4294967280 }
 0x3a3   :  { %665 = vsyncpa [#allocation3], 1 }

</bundles_post_ra>
